<compile_context>
chip_gen: v7x
topology: tpu7x:2x2x1
jax: 0.10.0
libtpu: 0.0.40
codegen_flags: <defaults>
</compile_context>

<pallas_src>
import math
import jax
import jax.numpy as jnp
from jax.experimental import pallas as pl
from jax.experimental.pallas import tpu as pltpu

_EPS = 1e-12  # F.normalize default eps


def _round_up(x, m):
    return ((x + m - 1) // m) * m


def _choose_tile_n(n, block_n):
    # Multiples of 8; for n >= 16 ensure the parallel grid axis has >= 2 steps
    # so v7x's two TensorCores both get work.
    if n >= 16:
        t = _round_up(-(-n // 2), 8)
    else:
        t = _round_up(n, 8)
    return max(8, min(block_n, t))


# ----------------------------------------------------------------------------
# Fused kernel: flat image tile -> pooled features -> normalized features ->
# cosine -> (optional) additive-angular-margin + scale.
# ----------------------------------------------------------------------------
def _make_fused_kernels(scale, margin, c_channels, hw, feat_dim):
    cos_m = math.cos(margin)
    sin_m = math.sin(margin)
    th = math.cos(math.pi - margin)
    mm = math.sin(math.pi - margin) * margin
    inv_hw = 1.0 / float(hw)

    def _normalized_features(x_ref, wproj_ref):
        x = x_ref[...].astype(jnp.float32)            # [tile_n, C*HW]
        wproj = wproj_ref[...].astype(jnp.float32)    # [C, D]
        tile_n = x.shape[0]
        feat = jnp.zeros((tile_n, feat_dim), jnp.float32)
        # K=C contraction as VPU broadcast-FMAs; 1/HW folded into the pooled
        # mean. Channel slices are static lane offsets (multiples of 128).
        for c in range(c_channels):
            mc = jnp.sum(x[:, c * hw:(c + 1) * hw], axis=-1,
                         keepdims=True) * inv_hw                # [tile_n, 1]
            feat = feat + mc * wproj[c, :].reshape(1, feat_dim)
        feat = jnp.maximum(feat, 0.0)                 # resnet features are post-ReLU
        # F.normalize(x) == x / max(||x||, eps)
        return feat * jax.lax.rsqrt(
            jnp.maximum(jnp.sum(feat * feat, axis=-1, keepdims=True),
                        _EPS * _EPS))

    def train_kernel(x_ref, wproj_ref, wn_ref, label_ref, out_ref):
        f_n = _normalized_features(x_ref, wproj_ref)          # [tile_n, D]
        w_n = wn_ref[...]                                     # [C_pad, D] pre-normalized
        cosine = jax.lax.dot_general(
            f_n, w_n, (((1,), (1,)), ((), ())),
            preferred_element_type=jnp.float32)               # [tile_n, C_pad]
        sine = jnp.sqrt(jnp.clip(1.0 - cosine * cosine, 0.0, 1.0))
        phi = cosine * cos_m - sine * sin_m
        phi = jnp.where(cosine > th, phi, cosine - mm)        # easy_margin=False
        lab = label_ref[...]                                  # [tile_n, 1] int32
        classes = jax.lax.broadcasted_iota(jnp.int32, cosine.shape, 1)
        one_hot = (classes == lab).astype(jnp.float32)
        out_ref[...] = (one_hot * phi + (1.0 - one_hot) * cosine) * scale

    def infer_kernel(x_ref, wproj_ref, wn_ref, out_ref):
        f_n = _normalized_features(x_ref, wproj_ref)
        w_n = wn_ref[...]
        out_ref[...] = jax.lax.dot_general(
            f_n, w_n, (((1,), (1,)), ((), ())),
            preferred_element_type=jnp.float32)               # plain cosine

    return train_kernel, infer_kernel


# ----------------------------------------------------------------------------
# Full model wrapper (mirrors CustomModel_Arc.forward(x, label)).
# ----------------------------------------------------------------------------
def custom_model_arc_forward(x_nchw, label, params, *, scale=30.0, margin=0.5,
                             block_n=256):
    w_proj = params["w_proj"]          # [C, D]
    arc_weight = params["arc_weight"]  # [num_classes, D]
    n, c, h, w = x_nchw.shape
    d = w_proj.shape[1]
    num_classes = arc_weight.shape[0]
    hw = h * w
    c_pad = _round_up(num_classes, 128)

    # Flat [N, C*HW] layout: pure reshape, batch dense on sublanes, lanes dense.
    x_flat = x_nchw.reshape(n, c * hw)

    # L2-normalize the Arc weight in plain jnp (tiny; XLA fuses with the pad),
    # then zero-pad the class axis to a lane multiple of 128.
    w32 = arc_weight.astype(jnp.float32)
    w_norm = w32 * jax.lax.rsqrt(
        jnp.maximum(jnp.sum(w32 * w32, axis=-1, keepdims=True), _EPS * _EPS))
    w_n = jnp.pad(w_norm, ((0, c_pad - num_classes), (0, 0)))

    tile_n = _choose_tile_n(n, block_n)
    grid = (pl.cdiv(n, tile_n),)

    train_kernel, infer_kernel = _make_fused_kernels(scale, margin, c, hw, d)

    cparams = pltpu.CompilerParams(dimension_semantics=("parallel",))

    x_spec = pl.BlockSpec((tile_n, c * hw), lambda i: (i, 0))
    wproj_spec = pl.BlockSpec((c, d), lambda i: (0, 0))
    wn_spec = pl.BlockSpec((c_pad, d), lambda i: (0, 0))
    out_spec = pl.BlockSpec((tile_n, c_pad), lambda i: (i, 0))
    out_shape = jax.ShapeDtypeStruct((n, c_pad), jnp.float32)

    if label is None:
        logits_pad = pl.pallas_call(
            infer_kernel,
            out_shape=out_shape,
            grid=grid,
            in_specs=[x_spec, wproj_spec, wn_spec],
            out_specs=out_spec,
            compiler_params=cparams,
        )(x_flat, w_proj, w_n)
    else:
        label2d = label.astype(jnp.int32).reshape(n, 1)
        label_spec = pl.BlockSpec((tile_n, 1), lambda i: (i, 0))
        logits_pad = pl.pallas_call(
            train_kernel,
            out_shape=out_shape,
            grid=grid,
            in_specs=[x_spec, wproj_spec, wn_spec, label_spec],
            out_specs=out_spec,
            compiler_params=cparams,
        )(x_flat, w_proj, w_n, label2d)

    # Slice off the lane-padded class columns.
    return logits_pad[:n, :num_classes]


def init_params(key, in_channels=3, feat_dim=512, num_classes=18):
    k1, k2 = jax.random.split(key)
    # Backbone stand-in projection.
    w_proj = jax.random.normal(k1, (in_channels, feat_dim), jnp.float32) * 0.1
    # xavier_uniform_ for ArcMargin weight [out_features, in_features].
    bound = math.sqrt(6.0 / (feat_dim + num_classes))
    arc_weight = jax.random.uniform(
        k2, (num_classes, feat_dim), jnp.float32, minval=-bound, maxval=bound)
    return {"w_proj": w_proj, "arc_weight": arc_weight}


if __name__ == "__main__":
    key = jax.random.PRNGKey(0)
    kx, kl, kp = jax.random.split(key, 3)

    # Small NCHW image batch consistent with the torch module's expected input.
    N, C, H, W = 2, 3, 16, 16
    NUM_CLASSES = 18
    x = jax.random.normal(kx, (N, C, H, W), jnp.float32)
    label = jax.random.randint(kl, (N,), 0, NUM_CLASSES, jnp.int32)
    params = init_params(kp, in_channels=C, feat_dim=512, num_classes=NUM_CLASSES)

    # Training-style forward (label given) and inference forward (label=None).
    logits = custom_model_arc_forward(x, label, params, scale=30.0, margin=0.5)
    cosine = custom_model_arc_forward(x, None, params, scale=30.0, margin=0.5)

    jax.block_until_ready(logits)
    jax.block_until_ready(cosine)

    assert logits.shape == (N, NUM_CLASSES)
    assert cosine.shape == (N, NUM_CLASSES)
    assert bool(jnp.all(jnp.isfinite(logits)))
    assert bool(jnp.all(jnp.abs(cosine) <= 1.0 + 1e-5))

    print("KERNEL_OK")
</pallas_src>

<mosaic_0001>
module attributes {stable_mosaic.version = 11 : i64} {
  func.func @train_kernel(%arg0: i32, %arg1: memref<8x768xf32, #tpu.memory_space<vmem>>, %arg2: memref<3x512xf32, #tpu.memory_space<vmem>>, %arg3: memref<128x512xf32, #tpu.memory_space<vmem>>, %arg4: memref<8x1xi32, #tpu.memory_space<vmem>>, %arg5: memref<8x128xf32, #tpu.memory_space<vmem>>) attributes {dimension_semantics = [#tpu.dimension_semantics<parallel>], iteration_bounds = array<i64: 1>, scalar_prefetch = 0 : i64, scratch_operands = 0 : i64, tpu.core_type = #tpu.core_type<tc>, window_params = [{transform_indices = @transform_0, window_bounds = array<i64: 8, 768>}, {pipeline_mode = #tpu.pipeline_mode<synchronous>, transform_indices = @transform_1, window_bounds = array<i64: 3, 512>}, {pipeline_mode = #tpu.pipeline_mode<synchronous>, transform_indices = @transform_2, window_bounds = array<i64: 128, 512>}, {transform_indices = @transform_3, window_bounds = array<i64: 8, 1>}, {transform_indices = @transform_4, window_bounds = array<i64: 8, 128>}]} {
    %c0 = arith.constant 0 : index
    %c0_0 = arith.constant 0 : index
    %0 = vector.load %arg1[%c0, %c0_0] : memref<8x768xf32, #tpu.memory_space<vmem>>, vector<8x768xf32>
    %c0_1 = arith.constant 0 : index
    %c0_2 = arith.constant 0 : index
    %1 = vector.load %arg2[%c0_1, %c0_2] : memref<3x512xf32, #tpu.memory_space<vmem>>, vector<3x512xf32>
    %cst = arith.constant 0.000000e+00 : f32
    %2 = vector.broadcast %cst : f32 to vector<8x512xf32>
    %3 = vector.extract_strided_slice %0 {offsets = [0, 0], sizes = [8, 256], strides = [1, 1]} : vector<8x768xf32> to vector<8x256xf32>
    %cst_3 = arith.constant dense<0.000000e+00> : vector<8xf32>
    %4 = vector.multi_reduction <add>, %3, %cst_3 [1] : vector<8x256xf32> to vector<8xf32>
    %5 = vector.shape_cast %4 : vector<8xf32> to vector<8x1xf32>
    %cst_4 = arith.constant 3.906250e-03 : f32
    %6 = vector.broadcast %cst_4 : f32 to vector<8x1xf32>
    %7 = arith.mulf %5, %6 : vector<8x1xf32>
    %8 = vector.extract_strided_slice %1 {offsets = [0, 0], sizes = [1, 512], strides = [1, 1]} : vector<3x512xf32> to vector<1x512xf32>
    %9 = vector.shape_cast %8 : vector<1x512xf32> to vector<512xf32>
    %10 = vector.shape_cast %9 : vector<512xf32> to vector<1x512xf32>
    %11 = vector.broadcast %7 : vector<8x1xf32> to vector<8x512xf32>
    %12 = vector.broadcast %10 : vector<1x512xf32> to vector<8x512xf32>
    %13 = arith.mulf %11, %12 : vector<8x512xf32>
    %14 = arith.addf %2, %13 : vector<8x512xf32>
    %15 = vector.extract_strided_slice %0 {offsets = [0, 256], sizes = [8, 256], strides = [1, 1]} : vector<8x768xf32> to vector<8x256xf32>
    %cst_5 = arith.constant dense<0.000000e+00> : vector<8xf32>
    %16 = vector.multi_reduction <add>, %15, %cst_5 [1] : vector<8x256xf32> to vector<8xf32>
    %17 = vector.shape_cast %16 : vector<8xf32> to vector<8x1xf32>
    %cst_6 = arith.constant 3.906250e-03 : f32
    %18 = vector.broadcast %cst_6 : f32 to vector<8x1xf32>
    %19 = arith.mulf %17, %18 : vector<8x1xf32>
    %20 = vector.extract_strided_slice %1 {offsets = [1, 0], sizes = [1, 512], strides = [1, 1]} : vector<3x512xf32> to vector<1x512xf32>
    %21 = vector.shape_cast %20 : vector<1x512xf32> to vector<512xf32>
    %22 = vector.shape_cast %21 : vector<512xf32> to vector<1x512xf32>
    %23 = vector.broadcast %19 : vector<8x1xf32> to vector<8x512xf32>
    %24 = vector.broadcast %22 : vector<1x512xf32> to vector<8x512xf32>
    %25 = arith.mulf %23, %24 : vector<8x512xf32>
    %26 = arith.addf %14, %25 : vector<8x512xf32>
    %27 = vector.extract_strided_slice %0 {offsets = [0, 512], sizes = [8, 256], strides = [1, 1]} : vector<8x768xf32> to vector<8x256xf32>
    %cst_7 = arith.constant dense<0.000000e+00> : vector<8xf32>
    %28 = vector.multi_reduction <add>, %27, %cst_7 [1] : vector<8x256xf32> to vector<8xf32>
    %29 = vector.shape_cast %28 : vector<8xf32> to vector<8x1xf32>
    %cst_8 = arith.constant 3.906250e-03 : f32
    %30 = vector.broadcast %cst_8 : f32 to vector<8x1xf32>
    %31 = arith.mulf %29, %30 : vector<8x1xf32>
    %32 = vector.extract_strided_slice %1 {offsets = [2, 0], sizes = [1, 512], strides = [1, 1]} : vector<3x512xf32> to vector<1x512xf32>
    %33 = vector.shape_cast %32 : vector<1x512xf32> to vector<512xf32>
    %34 = vector.shape_cast %33 : vector<512xf32> to vector<1x512xf32>
    %35 = vector.broadcast %31 : vector<8x1xf32> to vector<8x512xf32>
    %36 = vector.broadcast %34 : vector<1x512xf32> to vector<8x512xf32>
    %37 = arith.mulf %35, %36 : vector<8x512xf32>
    %38 = arith.addf %26, %37 : vector<8x512xf32>
    %cst_9 = arith.constant 0.000000e+00 : f32
    %39 = vector.broadcast %cst_9 : f32 to vector<8x512xf32>
    %40 = arith.maximumf %38, %39 : vector<8x512xf32>
    %41 = arith.mulf %40, %40 : vector<8x512xf32>
    %cst_10 = arith.constant dense<0.000000e+00> : vector<8xf32>
    %42 = vector.multi_reduction <add>, %41, %cst_10 [1] : vector<8x512xf32> to vector<8xf32>
    %43 = vector.shape_cast %42 : vector<8xf32> to vector<8x1xf32>
    %cst_11 = arith.constant 1.000000e-24 : f32
    %44 = vector.broadcast %cst_11 : f32 to vector<8x1xf32>
    %45 = arith.maximumf %43, %44 : vector<8x1xf32>
    %46 = math.rsqrt %45 : vector<8x1xf32>
    %47 = vector.broadcast %46 : vector<8x1xf32> to vector<8x512xf32>
    %48 = arith.mulf %40, %47 : vector<8x512xf32>
    %c0_12 = arith.constant 0 : index
    %c0_13 = arith.constant 0 : index
    %49 = vector.load %arg3[%c0_12, %c0_13] : memref<128x512xf32, #tpu.memory_space<vmem>>, vector<128x512xf32>
    %cst_14 = arith.constant dense<0.000000e+00> : vector<8x128xf32>
    %50 = tpu.matmul %48, %49, %cst_14 {dimension_numbers = #tpu.dot_dimension_numbers<[1], [1], [0], [0], [0, 0, 1, 0], [], []>} : vector<8x512xf32>, vector<128x512xf32>, vector<8x128xf32> -> vector<8x128xf32>
    %51 = arith.mulf %50, %50 : vector<8x128xf32>
    %cst_15 = arith.constant 1.000000e+00 : f32
    %52 = vector.broadcast %cst_15 : f32 to vector<8x128xf32>
    %53 = arith.subf %52, %51 : vector<8x128xf32>
    %cst_16 = arith.constant 0.000000e+00 : f32
    %cst_17 = arith.constant 1.000000e+00 : f32
    %54 = vector.broadcast %cst_16 : f32 to vector<8x128xf32>
    %55 = arith.maximumf %54, %53 : vector<8x128xf32>
    %56 = vector.broadcast %cst_17 : f32 to vector<8x128xf32>
    %57 = arith.minimumf %56, %55 : vector<8x128xf32>
    %58 = math.sqrt %57 : vector<8x128xf32>
    %cst_18 = arith.constant 0.87758255 : f32
    %59 = vector.broadcast %cst_18 : f32 to vector<8x128xf32>
    %60 = arith.mulf %50, %59 : vector<8x128xf32>
    %cst_19 = arith.constant 0.47942555 : f32
    %61 = vector.broadcast %cst_19 : f32 to vector<8x128xf32>
    %62 = arith.mulf %58, %61 : vector<8x128xf32>
    %63 = arith.subf %60, %62 : vector<8x128xf32>
    %cst_20 = arith.constant -0.87758255 : f32
    %64 = vector.broadcast %cst_20 : f32 to vector<8x128xf32>
    %65 = arith.cmpf ogt, %50, %64 : vector<8x128xf32>
    %cst_21 = arith.constant 0.239712775 : f32
    %66 = vector.broadcast %cst_21 : f32 to vector<8x128xf32>
    %67 = arith.subf %50, %66 : vector<8x128xf32>
    %68 = arith.select %65, %63, %67 : vector<8x128xi1>, vector<8x128xf32>
    %c0_22 = arith.constant 0 : index
    %c0_23 = arith.constant 0 : index
    %69 = vector.load %arg4[%c0_22, %c0_23] : memref<8x1xi32, #tpu.memory_space<vmem>>, vector<8x1xi32>
    %70 = tpu.iota {dimensions = array<i32: 1>} : vector<8x128xi32>
    %71 = vector.broadcast %69 : vector<8x1xi32> to vector<8x128xi32>
    %72 = arith.cmpi eq, %70, %71 : vector<8x128xi32>
    %73 = arith.extui %72 : vector<8x128xi1> to vector<8x128xi32>
    %74 = arith.sitofp %73 : vector<8x128xi32> to vector<8x128xf32>
    %75 = arith.mulf %74, %68 : vector<8x128xf32>
    %cst_24 = arith.constant 1.000000e+00 : f32
    %76 = vector.broadcast %cst_24 : f32 to vector<8x128xf32>
    %77 = arith.subf %76, %74 : vector<8x128xf32>
    %78 = arith.mulf %77, %50 : vector<8x128xf32>
    %79 = arith.addf %75, %78 : vector<8x128xf32>
    %cst_25 = arith.constant 3.000000e+01 : f32
    %80 = vector.broadcast %cst_25 : f32 to vector<8x128xf32>
    %81 = arith.mulf %79, %80 : vector<8x128xf32>
    %c0_26 = arith.constant 0 : index
    %c0_27 = arith.constant 0 : index
    %82 = vector.load %arg5[%c0_26, %c0_27] : memref<8x128xf32, #tpu.memory_space<vmem>>, vector<8x128xf32>
    tpu.vector_store %arg5[%c0_26, %c0_27], %81 {strides = array<i32>} : memref<8x128xf32, #tpu.memory_space<vmem>>, vector<8x128xf32>,
    return
  }
  func.func @transform_0(%arg0: i32) -> (i32, i32) {
    %c0_i32 = arith.constant 0 : i32
    %c0_i32_0 = arith.constant 0 : i32
    return %arg0, %c0_i32 : i32, i32
  }
  func.func @transform_1(%arg0: i32) -> (i32, i32) {
    %c0_i32 = arith.constant 0 : i32
    %c0_i32_0 = arith.constant 0 : i32
    %c0_i32_1 = arith.constant 0 : i32
    return %c0_i32, %c0_i32_0 : i32, i32
  }
  func.func @transform_2(%arg0: i32) -> (i32, i32) {
    %c0_i32 = arith.constant 0 : i32
    %c0_i32_0 = arith.constant 0 : i32
    %c0_i32_1 = arith.constant 0 : i32
    return %c0_i32, %c0_i32_0 : i32, i32
  }
  func.func @transform_3(%arg0: i32) -> (i32, i32) {
    %c0_i32 = arith.constant 0 : i32
    %c0_i32_0 = arith.constant 0 : i32
    return %arg0, %c0_i32 : i32, i32
  }
  func.func @transform_4(%arg0: i32) -> (i32, i32) {
    %c0_i32 = arith.constant 0 : i32
    %c0_i32_0 = arith.constant 0 : i32
    return %arg0, %c0_i32 : i32, i32
  }
}

</mosaic_0001>

<bundles_post_ra>
// kernel: tpu_custom_call.1
= control target key start
LH: loop header
LB: loop body
LE: loop exit
PB: predicated region body
PF: predicated region fallthrough
CT: control target
= control target key end

     0   :  { %9 = vsyncpa [#allocation3], 0  ;;  %s850_s0 = inlined_call_operand.hbm [shape: f32[2,768], index: 0, kind: input, shape index: {}]   ;;  %s851_s1 = inlined_call_operand.hbm [shape: f32[3,512], index: 1, kind: input, shape index: {}]   ;;  %s852_s2 = inlined_call_operand.hbm [shape: f32[128,512], index: 2, kind: input, shape index: {}]   ;;  %s853_s3 = inlined_call_operand.vmem [shape: s32[2,1], index: 3, kind: input, shape index: {}]   ;;  %s854_s4 = inlined_call_operand.hbm [shape: f32[2,128], index: 4, kind: output, shape index: {}]  }
   0x1   :  { %10 = vsyncpa [#allocation6], 0 }
   0x2   :  { %11 = vsyncpa [#allocation4], 0 }
   0x3   :  { %16 = vsyncadd [#allocation3], 576  ;;  %s740_s15 = smov [#allocation5]   ;;  %s741_s17 = smov [#allocation2]  }
   0x4   :  { %s30_s16 = sshll.u32 %s740_s15, 4  ;;  %s17_s18 = sshll.u32 %s741_s17, 4  ;;  %s31_s16 = int_to_ptr.vmem [resolvable:$true] %s30_s16  ;;  %s777_s18 = int_to_ptr.vmem [resolvable:$true] %s17_s18 }
   0x5   :  { %s646_s21 = scalar_lea.hbm %s851_s1, 256 }
   0x6   :  { %p647_p0 = scmp.ne.s32.totalorder %s851_s1, %s646_s21  ;;  %p650_p1 = scmp.lt.u32.totalorder %s646_s21, %s851_s1 }
   0x8   :  { %p652_p2 = pnand %p650_p1, %p647_p0 }
   0xa   :  { %655 = shalt.err (!%p652_p2)
}
   0xb   :  { %s656_s26 = scalar_lea.vmem %s31_s16, 256  ;;  %p661_p4 = scmp.lt.s32.totalorder %s31_s16, %s31_s16 }
   0xc   :  { %p657_p3 = scmp.ne.s32.totalorder %s31_s16, %s656_s26  ;;  %p662_p5 = scmp.lt.s32.totalorder %s656_s26, %s656_s26 }
   0xe   :  { %p663_p6 = por %p662_p5, %p661_p4 }
  0x10   :  { %p664_p7 = pnand %p663_p6, %p657_p3 }
  0x12   :  { %667 = shalt.err (!%p664_p7)
}
  0x13   :  { %33 = dma.hbm_to_vmem [thread:$0]  %s851_s1, 256, %s31_s16, [#allocation6]  }
  0x14   :  { %s668_s5 = scalar_lea.hbm %s850_s0, 192 }
  0x15   :  { %p669_p8 = scmp.ne.s32.totalorder %s850_s0, %s668_s5  ;;  %p672_p9 = scmp.lt.u32.totalorder %s668_s5, %s850_s0 }
  0x17   :  { %p674_p10 = pnand %p672_p9, %p669_p8 }
  0x19   :  { %677 = shalt.err (!%p674_p10)
}
  0x1a   :  { %s678_s10 = scalar_lea.vmem %s777_s18, 192  ;;  %s682_s1 = scalar_lea.vmem %s777_s18, 768 }
  0x1b   :  { %p679_p11 = scmp.ne.s32.totalorder %s777_s18, %s678_s10  ;;  %p683_p12 = scmp.lt.s32.totalorder %s777_s18, %s777_s18 }
  0x1c   :  { %p684_p13 = scmp.lt.s32.totalorder %s682_s1, %s678_s10 }
  0x1e   :  { %p685_p0 = por %p684_p13, %p683_p12 }
  0x20   :  { %p686_p1 = pnand %p685_p0, %p679_p11 }
  0x22   :  { %689 = shalt.err (!%p686_p1)
}
  0x23   :  { %s742_s11 = smov 192   ;;  %s743_s12 = smov 12  }
  0x24   :  { %23 = dma.hbm_to_vmem [thread:$0]  %s850_s0, 192, %s777_s18, [#allocation3], %s742_s11, %s742_s11, %s743_s12  }
  0x25   :  { %s744_s15 = smov [#allocation7]   ;;  %s690_s20 = scalar_lea.hbm %s852_s2, 8192 }
  0x26   :  { %s39_s16 = sshll.u32 %s744_s15, 4  ;;  %p691_p2 = scmp.ne.s32.totalorder %s852_s2, %s690_s20  ;;  %s40_s16 = int_to_ptr.vmem [resolvable:$true] %s39_s16 }
  0x27   :  { %p694_p3 = scmp.lt.u32.totalorder %s690_s20, %s852_s2 }
  0x29   :  { %p696_p4 = pnand %p694_p3, %p691_p2 }
  0x2b   :  { %699 = shalt.err (!%p696_p4)
}
  0x2c   :  { %s700_s25 = scalar_lea.vmem %s40_s16, 8192  ;;  %p705_p6 = scmp.lt.s32.totalorder %s40_s16, %s40_s16 }
  0x2d   :  { %p701_p5 = scmp.ne.s32.totalorder %s40_s16, %s700_s25  ;;  %p706_p7 = scmp.lt.s32.totalorder %s700_s25, %s700_s25 }
  0x2f   :  { %p707_p8 = por %p706_p7, %p705_p6 }
  0x31   :  { %p708_p9 = pnand %p707_p8, %p701_p5 }
  0x33   :  { %711 = shalt.err (!%p708_p9)
}
  0x34   :  { %s745_s0 = smov 512   ;;  %s746_s18 = smov 32  }
  0x35   :  { %45 = dma.hbm_to_vmem [thread:$0]  %s852_s2, 8192, %s40_s16, [#allocation6], %s745_s0, %s745_s0, %s746_s18  }
  0x36   :  { %734 = dma.done.wait [#allocation3], 768  }
  0x37   :  { %735 = vsyncadd [#allocation3], 4294966528 }
  0x38   :  { %736 = dma.done.wait [#allocation6], 8448  }
  0x39   :  { %737 = vsyncadd [#allocation6], 4294958848  ;;  %v76_v0 = vlaneseq  ;;  %v747_v1 = vmov 1983009808   ;;  %v634_v6 = vld [vmem:[#allocation2] ss:$12 sps:$4 sm:$0xff]  }
  0x3a   :  { %v74_v2 = vunpack.c.l.s4 %v747_v1  ;;  %v636_v7 = vld [vmem:[#allocation2 + $0x18] ss:$12 sps:$4 sm:$0xff]   ;;  %v639_v9 = vld [vmem:[#allocation2 + $0x1c] ss:$12 sps:$4 sm:$0xff]   ;;  %v641_v15 = vld [vmem:[#allocation2 + $0x20] ss:$12 sps:$4 sm:$0xff]  }
  0x3b   :  { %v823_v3 = vshrl.u32 %v76_v0, 7  ;;  %v638_v8 = vld [vmem:[#allocation2 + $0x4] ss:$12 sps:$4 sm:$0xff]   ;;  %v640_v14 = vld [vmem:[#allocation2 + $0x8] ss:$12 sps:$4 sm:$0xff]   ;;  %v303_v29 = vld [vmem:[#allocation7 + $0x18] sm:$0xff] }
  0x3c   :  { %v75_v4 = vunpack.c.0.s8 %v74_v2  ;;  %v301_v27 = vld [vmem:[#allocation7 + $0x8] sm:$0xff]  ;;  %v307_v31 = vld [vmem:[#allocation7 + $0x38] sm:$0xff]  ;;  %v300_v32 = vld [vmem:[#allocation7] sm:$0xff] }
  0x3d   :  { %v305_v28 = vld [vmem:[#allocation7 + $0x28] sm:$0xff]  ;;  %v304_v33 = vld [vmem:[#allocation7 + $0x20] sm:$0xff]  ;;  %v588_v34 = vpack.c.bf16 %v307_v31, %v303_v29  ;;  %v302_v36 = vld [vmem:[#allocation7 + $0x10] sm:$0xff] }
  0x3e   :  { %v78_v5 = vsub.s32 %v75_v4, %v823_v3  ;;  %v556_v30 = vpack.c.bf16 %v305_v28, %v301_v27  ;;  %v558_v35 = vpack.c.bf16 %v304_v33, %v300_v32  ;;  %v306_v37 = vld [vmem:[#allocation7 + $0x30] sm:$0xff]  ;;  %v309_v38 = vld [vmem:[#allocation7 + $0x48] sm:$0xff]  ;;  %v311_v41 = vld [vmem:[#allocation7 + $0x58] sm:$0xff] }
  0x3f   :  { %v590_v39 = vpack.c.bf16 %v306_v37, %v302_v36  ;;  %v313_v40 = vld [vmem:[#allocation7 + $0x68] sm:$0xff]  ;;  %v315_v42 = vld [vmem:[#allocation7 + $0x78] sm:$0xff]  ;;  %589 = vmatprep.subr.bf16.mxu0 %v588_v34  ;;  %v308_v45 = vld [vmem:[#allocation7 + $0x40] sm:$0xff]  ;;  %v99_v37 = vsub.s32 0, %v823_v3 }
  0x40   :  { %v79_v10 = vrot.slane %v634_v6, %v78_v5  ;;  %v86_v11 = vrot.slane %v636_v7, %v78_v5  ;;  %v149_v12 = vrot.slane %v638_v8, %v78_v5  ;;  %v156_v13 = vrot.slane %v639_v9, %v78_v5  ;;  %557 = vmatprep.subr.bf16.mxu1 %v556_v30  ;;  %v312_v46 = vld [vmem:[#allocation7 + $0x60] sm:$0xff]  ;;  %v310_v47 = vld [vmem:[#allocation7 + $0x50] sm:$0xff]  ;;  %v317_v49 = vld [vmem:[#allocation7 + $0x88] sm:$0xff] }
  0x41   :  { %v221_v20 = vrot.slane %v640_v14, %v78_v5  ;;  %v228_v21 = vrot.slane %v641_v15, %v78_v5  ;;  %559 = vmatpush1.bf16.xpose.msra.mxu1 %v558_v35  ;;  %v560_v43 = vpack.c.bf16 %v313_v40, %v309_v38  ;;  %v592_v44 = vpack.c.bf16 %v315_v42, %v311_v41  ;;  %v314_v48 = vld [vmem:[#allocation7 + $0x70] sm:$0xff]  ;;  %v321_v50 = vld [vmem:[#allocation7 + $0xa8] sm:$0xff]  ;;  %v319_v51 = vld [vmem:[#allocation7 + $0x98] sm:$0xff] }
  0x42   :  { %v87_v16 = vcombine.low %v79_v10, %v86_v11  ;;  %v88_v17 = vcombine.high %v79_v10, %v86_v11  ;;  %v157_v18 = vcombine.low %v149_v12, %v156_v13  ;;  %v158_v19 = vcombine.high %v149_v12, %v156_v13  ;;  %591 = vmatpush1.bf16.xpose.msra.mxu0 %v590_v39  ;;  %v323_v52 = vld [vmem:[#allocation7 + $0xb8] sm:$0xff]  ;;  %v316_v57 = vld [vmem:[#allocation7 + $0x80] sm:$0xff]  ;;  %v318_v59 = vld [vmem:[#allocation7 + $0x90] sm:$0xff] }
  0x43   :  { %v229_v23 = vcombine.low %v221_v20, %v228_v21  ;;  %v230_v24 = vcombine.high %v221_v20, %v228_v21  ;;  %561 = vmatprep.subr.bf16.mxu1 %v560_v43  ;;  %593 = vmatprep.subr.bf16.mxu0 %v592_v44  ;;  %v562_v53 = vpack.c.bf16 %v312_v46, %v308_v45  ;;  %v320_v58 = vld [vmem:[#allocation7 + $0xa0] sm:$0xff]  ;;  %v322_v60 = vld [vmem:[#allocation7 + $0xb0] sm:$0xff]  ;;  %v325_v61 = vld [vmem:[#allocation7 + $0xc8] sm:$0xff]  ;;  %v103_v39 = vsub.s32 4, %v823_v3 }
  0x44   :  { %v91_v22 = vadd.f32 %v88_v17, %v87_v16  ;;  %v161_v25 = vadd.f32 %v158_v19, %v157_v18  ;;  %v594_v54 = vpack.c.bf16 %v314_v48, %v310_v47  ;;  %v564_v55 = vpack.c.bf16 %v321_v50, %v317_v49  ;;  %v329_v62 = vld [vmem:[#allocation7 + $0xe8] sm:$0xff]  ;;  %v327_v63 = vld [vmem:[#allocation7 + $0xd8] sm:$0xff]  ;;  %v324_v7 = vld [vmem:[#allocation7 + $0xc0] sm:$0xff] }
  0x45   :  { %v233_v26 = vadd.f32 %v230_v24, %v229_v23  ;;  %v596_v56 = vpack.c.bf16 %v323_v52, %v319_v51  ;;  %v331_v1 = vld [vmem:[#allocation7 + $0xf8] sm:$0xff]  ;;  %v566_v2 = vpack.c.bf16 %v320_v58, %v316_v57  ;;  %v598_v4 = vpack.c.bf16 %v322_v60, %v318_v59  ;;  %v328_v8 = vld [vmem:[#allocation7 + $0xe0] sm:$0xff]  ;;  %v326_v9 = vld [vmem:[#allocation7 + $0xd0] sm:$0xff] }
  0x46   :  { %92 = vadd.xlane.f32.xlu0 %v91_v22  ;;  %v568_v5 = vpack.c.bf16 %v329_v62, %v325_v61  ;;  %v600_v6 = vpack.c.bf16 %v331_v1, %v327_v63  ;;  %v330_v10 = vld [vmem:[#allocation7 + $0xf0] sm:$0xff]  ;;  %v333_v11 = vld [vmem:[#allocation7 + $0x108] sm:$0xff]  ;;  %v335_v13 = vld [vmem:[#allocation7 + $0x118] sm:$0xff]  ;;  %v570_v15 = vpack.c.bf16 %v328_v8, %v324_v7  ;;  %v239_v41 = vsub.s32 2, %v823_v3 }
  0x47   :  { %234 = vadd.xlane.f32.xlu1 %v233_v26  ;;  %v337_v12 = vld [vmem:[#allocation7 + $0x128] sm:$0xff]  ;;  %v339_v14 = vld [vmem:[#allocation7 + $0x138] sm:$0xff]  ;;  %v602_v16 = vpack.c.bf16 %v330_v10, %v326_v9  ;;  %v332_v19 = vld [vmem:[#allocation7 + $0x100] sm:$0xff]  ;;  %v243_v42 = vsub.s32 6, %v823_v3  ;;  %v167_v43 = vsub.s32 1, %v823_v3  ;;  %v171_v44 = vsub.s32 5, %v823_v3 }
  0x48   :  { %v572_v17 = vpack.c.bf16 %v337_v12, %v333_v11  ;;  %v604_v18 = vpack.c.bf16 %v339_v14, %v335_v13  ;;  %v336_v20 = vld [vmem:[#allocation7 + $0x120] sm:$0xff]  ;;  %v334_v21 = vld [vmem:[#allocation7 + $0x110] sm:$0xff]  ;;  %v341_v23 = vld [vmem:[#allocation7 + $0x148] sm:$0xff] }
  0x49   :  { %563 = vmatpush1.bf16.xpose.msra.mxu1 %v562_v53  ;;  %v338_v22 = vld [vmem:[#allocation7 + $0x130] sm:$0xff]  ;;  %v345_v24 = vld [vmem:[#allocation7 + $0x168] sm:$0xff]  ;;  %v347_v26 = vld [vmem:[#allocation7 + $0x178] sm:$0xff]  ;;  %v574_v27 = vpack.c.bf16 %v336_v20, %v332_v19 }
  0x4a   :  { %162 = vadd.xlane.f32.xlu0 %v161_v25  ;;  %595 = vmatpush1.bf16.xpose.msra.mxu0 %v594_v54  ;;  %v343_v25 = vld [vmem:[#allocation7 + $0x158] sm:$0xff]  ;;  %v606_v28 = vpack.c.bf16 %v338_v22, %v334_v21  ;;  %v576_v29 = vpack.c.bf16 %v345_v24, %v341_v23  ;;  %v340_v31 = vld [vmem:[#allocation7 + $0x140] sm:$0xff]  ;;  %v342_v33 = vld [vmem:[#allocation7 + $0x150] sm:$0xff] }
  0x4b   :  { %565 = vmatprep.subr.bf16.mxu1 %v564_v55  ;;  %597 = vmatprep.subr.bf16.mxu0 %v596_v56  ;;  %v608_v30 = vpack.c.bf16 %v347_v26, %v343_v25  ;;  %v344_v32 = vld [vmem:[#allocation7 + $0x160] sm:$0xff]  ;;  %v346_v34 = vld [vmem:[#allocation7 + $0x170] sm:$0xff]  ;;  %v66_v40 = vld [vmem:[#allocation5 + $0x8] sm:$0x77] }
  0x4c   :  { %v578_v35 = vpack.c.bf16 %v344_v32, %v340_v31  ;;  %v610_v36 = vpack.c.bf16 %v346_v34, %v342_v33  ;;  %v65_v38 = vld [vmem:[#allocation5] sm:$0x77]  ;;  %v108_v47 = vrot.slane %v66_v40, %v99_v37  ;;  %v112_v48 = vrot.slane %v66_v40, %v103_v39 }
  0x4d   :  { %v100_v45 = vrot.slane %v65_v38, %v99_v37  ;;  %v104_v46 = vrot.slane %v65_v38, %v103_v39  ;;  %v240_v49 = vrot.slane %v65_v38, %v239_v41  ;;  %v244_v50 = vrot.slane %v65_v38, %v243_v42 }
  0x4e   :  { %v248_v51 = vrot.slane %v66_v40, %v239_v41  ;;  %v252_v52 = vrot.slane %v66_v40, %v243_v42  ;;  %v168_v53 = vrot.slane %v65_v38, %v167_v43  ;;  %v172_v54 = vrot.slane %v65_v38, %v171_v44 }
  0x4f   :  { %v176_v55 = vrot.slane %v66_v40, %v167_v43  ;;  %v180_v56 = vrot.slane %v66_v40, %v171_v44  ;;  %v120_v57 = vrot.slane %v100_v45, %v99_v37  ;;  %v124_v59 = vrot.slane %v104_v46, %v99_v37  ;;  %v353_v44 = vld [vmem:[#allocation7 + $0x1a8] sm:$0xff]  ;;  %v351_v45 = vld [vmem:[#allocation7 + $0x198] sm:$0xff] }
  0x50   :  { %v128_v60 = vrot.slane %v108_v47, %v99_v37  ;;  %v132_v61 = vrot.slane %v112_v48, %v99_v37  ;;  %v260_v63 = vrot.slane %v240_v49, %v239_v41  ;;  %v264_v3 = vrot.slane %v244_v50, %v239_v41  ;;  %v355_v47 = vld [vmem:[#allocation7 + $0x1b8] sm:$0xff]  ;;  %v348_v48 = vld [vmem:[#allocation7 + $0x180] sm:$0xff] }
  0x51   :  { %567 = vmatpush1.bf16.xpose.msra.mxu1 %v566_v2  ;;  %v268_v1 = vrot.slane %v248_v51, %v239_v41  ;;  %v272_v2 = vrot.slane %v252_v52, %v239_v41  ;;  %v200_v7 = vrot.slane %v180_v56, %v167_v43  ;;  %v352_v49 = vld [vmem:[#allocation7 + $0x1a0] sm:$0xff]  ;;  %v612_v50 = vpack.c.bf16 %v355_v47, %v351_v45  ;;  %v350_v52 = vld [vmem:[#allocation7 + $0x190] sm:$0xff]  ;;  %v361_v56 = vld [vmem:[#allocation7 + $0x1e8] sm:$0xff] }
  0x52   :  { %599 = vmatpush1.bf16.xpose.msra.mxu0 %v598_v4  ;;  %569 = vmatprep.subr.bf16.mxu1 %v568_v5  ;;  %v188_v4 = vrot.slane %v168_v53, %v167_v43  ;;  %v192_v5 = vrot.slane %v172_v54, %v167_v43  ;;  %v582_v51 = vpack.c.bf16 %v352_v49, %v348_v48  ;;  %v354_v53 = vld [vmem:[#allocation7 + $0x1b0] sm:$0xff] }
  0x53   :  { %601 = vmatprep.subr.bf16.mxu0 %v600_v6  ;;  %v196_v6 = vrot.slane %v176_v55, %v167_v43  ;;  %v349_v43 = vld [vmem:[#allocation7 + $0x188] sm:$0xff]  ;;  %v614_v54 = vpack.c.bf16 %v354_v53, %v350_v52 }
  0x54   :  { %v580_v46 = vpack.c.bf16 %v353_v44, %v349_v43  ;;  %v357_v55 = vld [vmem:[#allocation7 + $0x1c8] sm:$0xff] }
  0x59   :  { %571 = vmatpush1.bf16.xpose.msra.mxu1 %v570_v15 }
  0x5a   :  { %603 = vmatpush1.bf16.xpose.msra.mxu0 %v602_v16  ;;  %573 = vmatprep.subr.bf16.mxu1 %v572_v17 }
  0x5b   :  { %605 = vmatprep.subr.bf16.mxu0 %v604_v18 }
  0x61   :  { %575 = vmatpush1.bf16.xpose.msra.mxu1 %v574_v27 }
  0x62   :  { %607 = vmatpush1.bf16.xpose.msra.mxu0 %v606_v28  ;;  %577 = vmatprep.subr.bf16.mxu1 %v576_v29 }
  0x63   :  { %609 = vmatprep.subr.bf16.mxu0 %v608_v30 }
  0x69   :  { %579 = vmatpush1.bf16.xpose.msra.mxu1 %v578_v35 }
  0x6a   :  { %611 = vmatpush1.bf16.xpose.msra.mxu0 %v610_v36  ;;  %581 = vmatprep.subr.bf16.mxu1 %v580_v46 }
  0x6b   :  { %613 = vmatprep.subr.bf16.mxu0 %v612_v50 }
  0x71   :  { %583 = vmatpush1.bf16.xpose.msra.mxu1 %v582_v51 }
  0x72   :  { %615 = vmatpush1.bf16.xpose.msra.mxu0 %v614_v54 }
  0xd3   :  { %v93_v58 = vpop.xlane.xlu0 %92 }
  0xd4   :  { %v94_v62 = vmul.f32 0.00390625, %v93_v58  ;;  %v235_v8 = vpop.xlane.xlu1 %234  ;;  %v584_v58 = vpack.c.bf16 %v361_v56, %v357_v55 }
  0xd5   :  { %v236_v11 = vmul.f32 0.00390625, %v235_v8 }
  0xd6   :  { %v133_v9 = vmul.f32 %v120_v57, %v94_v62  ;;  %v134_v12 = vmul.f32 %v124_v59, %v94_v62  ;;  %v135_v13 = vmul.f32 %v128_v60, %v94_v62  ;;  %v136_v14 = vmul.f32 %v132_v61, %v94_v62  ;;  %v359_v57 = vld [vmem:[#allocation7 + $0x1d8] sm:$0xff]  ;;  %v356_v60 = vld [vmem:[#allocation7 + $0x1c0] sm:$0xff]  ;;  %585 = vmatprep.subr.bf16.mxu1 %v584_v58 }
  0xd7   :  { %v163_v10 = vpop.xlane.xlu0 %162  ;;  %v273_v16 = vmul.f32 %v260_v63, %v236_v11  ;;  %v274_v17 = vmul.f32 %v264_v3, %v236_v11  ;;  %v275_v18 = vmul.f32 %v268_v1, %v236_v11  ;;  %v276_v19 = vmul.f32 %v272_v2, %v236_v11  ;;  %v363_v59 = vld [vmem:[#allocation7 + $0x1f8] sm:$0xff]  ;;  %v360_v61 = vld [vmem:[#allocation7 + $0x1e0] sm:$0xff]  ;;  %v358_v63 = vld [vmem:[#allocation7 + $0x1d0] sm:$0xff] }
  0xd8   :  { %v164_v15 = vmul.f32 0.00390625, %v163_v10  ;;  %v616_v62 = vpack.c.bf16 %v363_v59, %v359_v57  ;;  %v362_v3 = vld [vmem:[#allocation7 + $0x1f0] sm:$0xff]  ;;  %v586_v1 = vpack.c.bf16 %v360_v61, %v356_v60 }
  0xd9   :  { %v618_v2 = vpack.c.bf16 %v362_v3, %v358_v63 }
  0xda   :  { %v201_v20 = vmul.f32 %v188_v4, %v164_v15  ;;  %v202_v21 = vmul.f32 %v192_v5, %v164_v15  ;;  %v203_v22 = vmul.f32 %v196_v6, %v164_v15  ;;  %v204_v23 = vmul.f32 %v200_v7, %v164_v15  ;;  %617 = vmatprep.subr.bf16.mxu0 %v616_v62  ;;  %v521_v4 = vld [vmem:[%s853_s3] sm:$0xff] }
  0xdb   :  { %587 = vmatpush1.bf16.xpose.msra.mxu1 %v586_v1  ;;  %619 = vmatpush1.bf16.xpose.msra.mxu0 %v618_v2  ;;  %v748_v5 = vmov 0  }
  0xdc   :  { %v205_v24 = vadd.f32 %v201_v20, %v133_v9  ;;  %v206_v25 = vadd.f32 %v202_v21, %v134_v12  ;;  %v207_v26 = vadd.f32 %v203_v22, %v135_v13  ;;  %v208_v27 = vadd.f32 %v204_v23, %v136_v14  ;;  %633 = vset.pattern.permute.xlu0 %v748_v5 }
  0xdd   :  { %525 = vperm.xlu0 %633, %v521_v4   ;;  %v523_v22 = vand.u32 127, %v76_v0 }
  0xde   :  { %v277_v28 = vadd.f32 %v273_v16, %v205_v24  ;;  %v278_v29 = vadd.f32 %v274_v17, %v206_v25  ;;  %v279_v30 = vadd.f32 %v275_v18, %v207_v26  ;;  %v280_v31 = vadd.f32 %v276_v19, %v208_v27 }
  0xdf   :  { %v749_v27 = vmov 0.0  }
  0xe0   :  { %v281_v32 = vmax.f32 %v277_v28, 0.0  ;;  %v282_v33 = vmax.f32 %v278_v29, 0.0  ;;  %v283_v34 = vmax.f32 %v279_v30, 0.0  ;;  %v284_v35 = vmax.f32 %v280_v31, 0.0 }
  0xe2   :  { %v285_v36 = vmul.f32 %v281_v32, %v281_v32  ;;  %v286_v37 = vmul.f32 %v282_v33, %v282_v33  ;;  %v287_v38 = vmul.f32 %v283_v34, %v283_v34  ;;  %v288_v40 = vmul.f32 %v284_v35, %v284_v35 }
  0xe4   :  { %v289_v39 = vadd.f32 %v286_v37, %v285_v36 }
  0xe6   :  { %v290_v41 = vadd.f32 %v289_v39, %v287_v38 }
  0xe8   :  { %v291_v42 = vadd.f32 %v290_v41, %v288_v40 }
  0xea   :  { %292 = vadd.xlane.f32.xlu1 %v291_v42 }
 0x15c   :  { %v526_v23 = vpop.permute.xlu0 %525 }
 0x15d   :  { %vm527_vm0 = vcmp.eq.s32.totalorder %v523_v22, %v526_v23 }
 0x15e   :  { %v555_v28 = vsel %vm527_vm0, 1.0, %v749_v27 }
 0x177   :  { %v293_v6 = vpop.xlane.xlu1 %292 }
 0x178   :  { %v294_v7 = vmax.f32 %v293_v6, 1e-24 }
 0x17a   :  { %642 = vrsqrt.f32 %v294_v7 }
 0x184   :  { %v643_v8 = vpop.eup %642 }
 0x185   :  { %v297_v9 = vmul.f32 %v643_v8, %v282_v33  ;;  %v299_v10 = vmul.f32 %v643_v8, %v284_v35  ;;  %v296_v11 = vmul.f32 %v643_v8, %v281_v32  ;;  %v298_v12 = vmul.f32 %v643_v8, %v283_v34 }
 0x186   :  { %v531_v33 = vsub.f32 1.0, %v555_v28 }
 0x187   :  { %428 = vmatprep.mubr.f32.mxu1 %v297_v9  ;;  %498 = vmatprep.mubr.f32.mxu0 %v299_v10 }
 0x188   :  { %429 = vmatmul.mubr.f32.vlgmr.msra.gmra.mrb[0].mxu1 %v296_v11  ;;  %499 = vmatmul.mubr.f32.vlgmr.msra.gmra.mrb[0].mxu0 %v298_v12 }
 0x25b   :  { %v430_v13 = vpop.f32.mrb[0].mxu1  ;;  %v500_v14 = vpop.f32.mrb[0].mxu0 }
 0x25c   :  { %v501_v15 = vadd.f32 %v500_v14, %v430_v13  ;;  %v432_v16 = vpop.f32.mrb[1].mxu1  ;;  %v502_v17 = vpop.f32.mrb[1].mxu0 }
 0x25e   :  { %v504_v18 = vmul.f32 %v501_v15, %v501_v15  ;;  %v515_v31 = vmul.f32 0.87758255, %v501_v15  ;;  %v554_v35 = vadd.f32 -0.23971277, %v501_v15  ;;  %vm518_vm3 = vcmp.gt.f32.partialorder %v501_v15, -0.87758255 }
 0x25f   :  { %v532_v0 = vmul.f32 %v531_v33, %v501_v15 }
 0x260   :  { %v505_v19 = vsub.f32 1.0, %v504_v18 }
 0x262   :  { %v506_v20 = vmax.f32 %v505_v19, 0.0 }
 0x264   :  { %v507_v21 = vmin.f32 %v506_v20, 1.0 }
 0x266   :  { %644 = vrsqrt.f32 %v507_v21  ;;  %vm510_vm1 = vcmp.eq.f32.partialorder %v507_v21, inf  ;;  %v513_v26 = vand.u32 2147483648, %v507_v21  ;;  %vm512_vm2 = vcmp.eq.f32.partialorder %v507_v21, 0.0 }
 0x270   :  { %v645_v24 = vpop.eup %644 }
 0x271   :  { %v509_v25 = vmul.f32 %v645_v24, %v507_v21 }
 0x273   :  { %v511_v29 = vsel %vm510_vm1, %v507_v21, %v509_v25 }
 0x274   :  { %v514_v30 = vsel %vm512_vm2, %v513_v26, %v511_v29 }
 0x275   :  { %v516_v32 = vmul.f32 0.47942555, %v514_v30 }
 0x277   :  { %v517_v34 = vsub.f32 %v515_v31, %v516_v32 }
 0x279   :  { %v520_v36 = vsel %vm518_vm3, %v517_v34, %v554_v35 }
 0x27a   :  { %v530_v37 = vmul.f32 %v555_v28, %v520_v36 }
 0x27c   :  { %v533_v38 = vadd.f32 %v532_v0, %v530_v37 }
 0x27e   :  { %v534_v39 = vmul.f32 30.0, %v533_v38 }
 0x280   :  { %535 = vst [vmem:[#allocation8] sm:$0xff] %v534_v39 }
 0x281   :  { %540 = vsyncadd [#allocation4], 96  ;;  %s750_s3 = smov [#allocation8]  }
 0x282   :  { %s541_s29 = sshll.u32 %s750_s3, 4  ;;  %s542_s29 = int_to_ptr.vmem [resolvable:$true] %s541_s29 }
 0x283   :  { %s712_s30 = scalar_lea.vmem %s542_s29, 32  ;;  %s716_s5 = scalar_lea.vmem %s542_s29, 128 }
 0x284   :  { %p713_p10 = scmp.ne.s32.totalorder %s542_s29, %s712_s30  ;;  %p717_p11 = scmp.lt.s32.totalorder %s542_s29, %s542_s29 }
 0x285   :  { %p718_p12 = scmp.lt.s32.totalorder %s716_s5, %s712_s30 }
 0x287   :  { %p719_p13 = por %p718_p12, %p717_p11 }
 0x289   :  { %p720_p0 = pnand %p719_p13, %p713_p10 }
 0x28b   :  { %723 = shalt.err (!%p720_p0)
}
 0x28c   :  { %s724_s8 = scalar_lea.hbm %s854_s4, 32 }
 0x28d   :  { %p725_p1 = scmp.ne.s32.totalorder %s854_s4, %s724_s8  ;;  %p728_p2 = scmp.lt.u32.totalorder %s724_s8, %s854_s4 }
 0x28f   :  { %p730_p3 = pnand %p728_p2, %p725_p1 }
 0x291   :  { %733 = shalt.err (!%p730_p3)
}
 0x292   :  { %s751_s12 = smov 2  }
 0x293   :  { %547 = dma.vmem_to_hbm [thread:$0]  %s542_s29, 32, %s854_s4, [#allocation4], %s746_s18, %s746_s18, %s751_s12  }
 0x294   :  { %738 = dma.done.wait [#allocation4], 128  }
 0x295   :  { %739 = vsyncadd [#allocation4], 4294967168 }
 0x296   :  { %551 = vsyncpa [#allocation3], 1 }
 0x297   :  { %552 = vsyncpa [#allocation6], 1 }
 0x298   :  { %553 = vsyncpa [#allocation4], 1 }

</bundles_post_ra>
